<compile_context>
chip_gen: v7x
topology: tpu7x:2x2x1
jax: 0.10.0
libtpu: 0.0.40
codegen_flags: <defaults>
</compile_context>

<pallas_src>
import math
import functools

import jax
import jax.numpy as jnp
from jax import lax
from jax.experimental import pallas as pl
from jax.experimental.pallas import tpu as pltpu

_NEG_BIG = -1e30


def _flash_fwd_kernel(q_ref, k_ref, v_ref, o_ref, m_sc, l_sc, acc_sc,
                      *, causal, tq, tk_inner, tk_outer, approx_recip):
    i = pl.program_id(1)            # q-block index
    j = pl.program_id(2)            # resident kv-outer block index
    n_inner = tk_outer // tk_inner  # static python int

    @pl.when(j == 0)
    def _init():
        m_sc[...] = jnp.full_like(m_sc, -jnp.inf)
        l_sc[...] = jnp.zeros_like(l_sc)
        acc_sc[...] = jnp.zeros_like(acc_sc)

    # Softmax scale was folded into q by the wrapper's fused relayout pass.
    q = q_ref[...]                                              # (tq, D)

    def _attend(c, masked):
        start = c * tk_inner
        if not isinstance(c, int):
            start = pl.multiple_of(start, tk_inner)
        k = k_ref[pl.ds(start, tk_inner), :]                    # (tk_inner, D)
        v = v_ref[pl.ds(start, tk_inner), :]                    # (tk_inner, D)

        # Contract last axis of both operands -> no explicit k transpose.
        s = lax.dot_general(q, k, (((1,), (1,)), ((), ())),
                            preferred_element_type=jnp.float32)  # (tq, tk_inner)
        if masked:
            row = i * tq + lax.broadcasted_iota(jnp.int32, (tq, tk_inner), 0)
            col = (j * tk_outer + start
                   + lax.broadcasted_iota(jnp.int32, (tq, tk_inner), 1))
            s = jnp.where(col <= row, s, _NEG_BIG)

        m_prev = m_sc[...]                                       # (tq, 1)
        m_new = jnp.maximum(m_prev, s.max(axis=-1, keepdims=True))
        alpha = jnp.exp(m_prev - m_new)
        p = jnp.exp(s - m_new)                                   # (tq, tk_inner)
        l_sc[...] = alpha * l_sc[...] + p.sum(axis=-1, keepdims=True)
        acc_sc[...] = alpha * acc_sc[...] + jnp.dot(
            p.astype(v.dtype), v, preferred_element_type=jnp.float32)
        m_sc[...] = m_new

    def _nomask_body(c, carry):
        _attend(c, masked=False)
        return carry

    def _mask_body(c, carry):
        _attend(c, masked=True)
        return carry

    if causal:
        q_start = i * tq
        q_end = q_start + (tq - 1)
        kv0 = j * tk_outer
        if n_inner == 1:
            k_last = kv0 + (tk_inner - 1)

            @pl.when(k_last <= q_start)           # fully visible: no mask work
            def _full():
                _attend(0, masked=False)

            @pl.when((kv0 <= q_end) & (k_last > q_start))   # diagonal block
            def _diag():
                _attend(0, masked=True)
            # kv0 > q_end: fully masked -> no compute; its HBM DMA was already
            # elided by the clamped index_map in the wrapper.
        else:
            @pl.when(kv0 <= q_end)
            def _compute():
                # chunks entirely below the diagonal (no mask needed)
                n_full = jnp.clip((q_start + 1 - kv0) // tk_inner, 0, n_inner)
                # chunks whose first column is still visible
                n_need = jnp.clip((q_end - kv0) // tk_inner + 1, 0, n_inner)
                lax.fori_loop(0, n_full, _nomask_body, 0)
                lax.fori_loop(n_full, n_need, _mask_body, 0)
    else:
        if n_inner == 1:
            _attend(0, masked=False)
        else:
            lax.fori_loop(0, n_inner, _nomask_body, 0, unroll=n_inner <= 4)

    @pl.when(j == pl.num_programs(2) - 1)
    def _finalize():
        inv_l = pl.reciprocal(l_sc[...], approx=approx_recip)
        o_ref[0] = (acc_sc[...] * inv_l).astype(o_ref.dtype)


def _pick_tile(s, target):
    """Largest MXU-friendly tile <= target that divides s.

    Prefers multiples of 256 (v6e/v7x MXU is 2x256^2), then 128, then 8.
    Falls back to the full extent (always a legal block shape).
    """
    if s <= target:
        return s
    for grain in (256, 128, 8):
        t = (target // grain) * grain
        while t >= grain:
            if s % t == 0:
                return t
            t -= grain
    return s


def _chip_defaults():
    """(tq_target, tk_inner_target) tuned per TPU generation."""
    try:
        kind = jax.devices()[0].device_kind.lower()
    except Exception:
        kind = ""
    if "v5 lite" in kind or "v5e" in kind or "v5lite" in kind:
        # v5e: no bf16 VALU/EUP and a single vector-store slot -> keep the
        # (tq, tk) f32 score tile smaller to limit spill traffic.
        return 256, 256
    return 256, 512


def flash_attention(qkv, softmax_scale=None, causal=False, *,
                    tq=None, tk_inner=None,
                    kv_budget_bytes=16 * 1024 * 1024,
                    compute_dtype=None,
                    approx_recip=True):
    """Equivalent of FlashAttention.forward(qkv) with key_padding_mask=None,
    cu_seqlens=None and dropout disabled (eval mode). Returns (output, None)."""
    B, S, three, H, D = qkv.shape
    assert three == 3
    scale = float(softmax_scale) if softmax_scale is not None else 1.0 / math.sqrt(D)

    if compute_dtype is None:
        # bf16 matmul operands (f32 accumulation) when the caller hands us f32.
        # NOTE: intentional deviation from a pure-f32 reference; pass
        # compute_dtype=jnp.float32 for stricter parity.
        compute_dtype = jnp.bfloat16 if qkv.dtype == jnp.float32 else qkv.dtype
    itemsize = jnp.dtype(compute_dtype).itemsize

    tq_tgt, tk_tgt = _chip_defaults()
    tq = _pick_tile(S, tq if tq is not None else tq_tgt)
    tk_inner = _pick_tile(S, tk_inner if tk_inner is not None else tk_tgt)

    # K/V residency: largest multiple of tk_inner that divides S and keeps the
    # (double-buffered) resident K+V block within the VMEM budget.
    max_rows = max(tk_inner, kv_budget_bytes // (4 * D * itemsize))
    tk_outer = tk_inner
    for m in range(S // tk_inner, 0, -1):
        rows = m * tk_inner
        if S % rows == 0 and rows <= max_rows:
            tk_outer = rows
            break

    # Single fused relayout pass: fold the softmax scale into q (in the input
    # dtype, before the cast), cast to the compute dtype, and transpose once to
    # a packed (3, B*H, S, D) slab (seq on sublanes, head_dim on lanes).
    scale_vec = jnp.asarray([scale, 1.0, 1.0],
                            dtype=qkv.dtype).reshape(1, 1, 3, 1, 1)
    qkv_t = jnp.transpose((qkv * scale_vec).astype(compute_dtype),
                          (2, 0, 3, 1, 4)).reshape(3, B * H, S, D)

    n_q = S // tq
    n_kv = S // tk_outer

    def _last_kv_blk(i):
        return (i * tq + tq - 1) // tk_outer

    def q_index(b, i, j):
        return (0, b, i, 0)

    def k_index(b, i, j):
        jj = jnp.minimum(j, _last_kv_blk(i)) if causal else j
        return (1, b, jj, 0)

    def v_index(b, i, j):
        jj = jnp.minimum(j, _last_kv_blk(i)) if causal else j
        return (2, b, jj, 0)

    kernel = functools.partial(_flash_fwd_kernel, causal=causal, tq=tq,
                               tk_inner=tk_inner, tk_outer=tk_outer,
                               approx_recip=approx_recip)

    out_itemsize = jnp.dtype(qkv.dtype).itemsize
    vmem_est = (4 * tk_outer * D * itemsize        # K,V double-buffered
                + 2 * tq * D * itemsize            # Q double-buffered
                + 2 * tq * D * out_itemsize        # O double-buffered
                + tq * D * 4 + 2 * tq * 4          # f32 scratch
                + 2 * tq * tk_inner * 4)           # s/p spill headroom
    vmem_limit = int(min(max(2 * vmem_est, 32 * 1024 * 1024), 48 * 1024 * 1024))

    out = pl.pallas_call(
        kernel,
        out_shape=jax.ShapeDtypeStruct((B * H, S, D), qkv.dtype),
        grid_spec=pltpu.PrefetchScalarGridSpec(
            num_scalar_prefetch=0,
            grid=(B * H, n_q, n_kv),
            in_specs=[
                pl.BlockSpec((None, None, tq, D), q_index),
                pl.BlockSpec((None, None, tk_outer, D), k_index),
                pl.BlockSpec((None, None, tk_outer, D), v_index),
            ],
            out_specs=pl.BlockSpec((1, tq, D), lambda b, i, j: (b, i, 0)),
            scratch_shapes=[
                pltpu.VMEM((tq, 1), jnp.float32),   # running max m_i
                pltpu.VMEM((tq, 1), jnp.float32),   # running denom l_i
                pltpu.VMEM((tq, D), jnp.float32),   # output accumulator
            ],
        ),
        compiler_params=pltpu.CompilerParams(
            dimension_semantics=("parallel", "parallel", "arbitrary"),
            vmem_limit_bytes=vmem_limit),
    )(qkv_t, qkv_t, qkv_t)

    out = out.reshape(B, H, S, D).transpose(0, 2, 1, 3)   # -> (b, s, h, d)
    return out, None


def _reference_attention(qkv, softmax_scale=None, causal=False):
    B, S, _, H, D = qkv.shape
    scale = softmax_scale if softmax_scale is not None else 1.0 / math.sqrt(D)
    q = qkv[:, :, 0].astype(jnp.float32)
    k = qkv[:, :, 1].astype(jnp.float32)
    v = qkv[:, :, 2].astype(jnp.float32)
    s = jnp.einsum('bqhd,bkhd->bhqk', q, k) * scale
    if causal:
        mask = jnp.tril(jnp.ones((S, S), dtype=bool))
        s = jnp.where(mask, s, -jnp.inf)
    p = jax.nn.softmax(s, axis=-1)
    return jnp.einsum('bhqk,bkhd->bqhd', p, v).astype(qkv.dtype)


if __name__ == "__main__":
    # Case 1: defaults -> whole sequence resident (n_kv=1, single-chunk path).
    B, S, H, D = 2, 128, 2, 32
    qkv = jax.random.normal(jax.random.PRNGKey(0), (B, S, 3, H, D),
                            dtype=jnp.float32)

    out, attn_w = flash_attention(qkv, softmax_scale=None, causal=False)
    out = jax.block_until_ready(out)
    assert attn_w is None
    assert out.shape == (B, S, H, D)
    ref = _reference_attention(qkv, softmax_scale=None, causal=False)
    assert jnp.allclose(out, ref, atol=5e-2, rtol=5e-2), (
        float(jnp.max(jnp.abs(out - ref))))

    out_c, _ = flash_attention(qkv, causal=True)
    out_c = jax.block_until_ready(out_c)
    ref_c = _reference_attention(qkv, causal=True)
    assert jnp.allclose(out_c, ref_c, atol=5e-2, rtol=5e-2), (
        float(jnp.max(jnp.abs(out_c - ref_c))))

    # Case 2: small tiles + tiny K/V VMEM budget -> exercises the kv grid axis
    # (init/finalize across j), the in-kernel chunk loops with dynamic bounds,
    # and the clamped causal K/V index_map (elided DMAs past the diagonal).
    B2, S2, H2, D2 = 1, 256, 2, 32
    qkv2 = jax.random.normal(jax.random.PRNGKey(1), (B2, S2, 3, H2, D2),
                             dtype=jnp.float32)

    out2, _ = flash_attention(qkv2, causal=False, tq=64, tk_inner=64,
                              kv_budget_bytes=32 * 1024)
    out2 = jax.block_until_ready(out2)
    ref2 = _reference_attention(qkv2, causal=False)
    assert jnp.allclose(out2, ref2, atol=5e-2, rtol=5e-2), (
        float(jnp.max(jnp.abs(out2 - ref2))))

    out2c, _ = flash_attention(qkv2, causal=True, tq=64, tk_inner=64,
                               kv_budget_bytes=32 * 1024)
    out2c = jax.block_until_ready(out2c)
    ref2c = _reference_attention(qkv2, causal=True)
    assert jnp.allclose(out2c, ref2c, atol=5e-2, rtol=5e-2), (
        float(jnp.max(jnp.abs(out2c - ref2c))))

    # Case 3: multi-chunk static loop, whole sequence resident (non-causal).
    out3, _ = flash_attention(qkv2, causal=False, tq=128, tk_inner=128)
    out3 = jax.block_until_ready(out3)
    assert jnp.allclose(out3, ref2, atol=5e-2, rtol=5e-2), (
        float(jnp.max(jnp.abs(out3 - ref2))))

    print("KERNEL_OK")
</pallas_src>

<mosaic_0001>
module attributes {stable_mosaic.version = 11 : i64} {
  func.func @_flash_fwd_kernel(%arg0: i32, %arg1: i32, %arg2: i32, %arg3: memref<1x1x128x32xbf16, #tpu.memory_space<vmem>>, %arg4: memref<1x1x128x32xbf16, #tpu.memory_space<vmem>>, %arg5: memref<1x1x128x32xbf16, #tpu.memory_space<vmem>>, %arg6: memref<1x128x32xf32, #tpu.memory_space<vmem>>, %arg7: memref<128x1xf32, #tpu.memory_space<vmem>>, %arg8: memref<128x1xf32, #tpu.memory_space<vmem>>, %arg9: memref<128x32xf32, #tpu.memory_space<vmem>>) attributes {dimension_semantics = [#tpu.dimension_semantics<parallel>, #tpu.dimension_semantics<parallel>, #tpu.dimension_semantics<arbitrary>], iteration_bounds = array<i64: 4, 1, 1>, scalar_prefetch = 0 : i64, scratch_operands = 3 : i64, tpu.core_type = #tpu.core_type<tc>, window_params = [{transform_indices = @transform_0, window_bounds = array<i64: 1, 1, 128, 32>}, {transform_indices = @transform_1, window_bounds = array<i64: 1, 1, 128, 32>}, {transform_indices = @transform_2, window_bounds = array<i64: 1, 1, 128, 32>}, {transform_indices = @transform_3, window_bounds = array<i64: 1, 128, 32>}]} {
    %c0_i32 = arith.constant 0 : i32
    %0 = arith.cmpi eq, %arg2, %c0_i32 : i32
    %1 = arith.extui %0 : i1 to i32
    %c0_i32_0 = arith.constant 0 : i32
    %2 = arith.cmpi ne, %1, %c0_i32_0 : i32
    scf.if %2 {
      %cst_29 = arith.constant 0xFF800000 : f32
      %36 = vector.broadcast %cst_29 : f32 to vector<128x1xf32>
      %c0_30 = arith.constant 0 : index
      %c0_31 = arith.constant 0 : index
      %37 = vector.load %arg7[%c0_30, %c0_31] : memref<128x1xf32, #tpu.memory_space<vmem>>, vector<128x1xf32>
      tpu.vector_store %arg7[%c0_30, %c0_31], %36 {strides = array<i32>} : memref<128x1xf32, #tpu.memory_space<vmem>>, vector<128x1xf32>,
      %cst_32 = arith.constant 0.000000e+00 : f32
      %38 = vector.broadcast %cst_32 : f32 to vector<128x1xf32>
      %c0_33 = arith.constant 0 : index
      %c0_34 = arith.constant 0 : index
      %39 = vector.load %arg8[%c0_33, %c0_34] : memref<128x1xf32, #tpu.memory_space<vmem>>, vector<128x1xf32>
      tpu.vector_store %arg8[%c0_33, %c0_34], %38 {strides = array<i32>} : memref<128x1xf32, #tpu.memory_space<vmem>>, vector<128x1xf32>,
      %cst_35 = arith.constant 0.000000e+00 : f32
      %40 = vector.broadcast %cst_35 : f32 to vector<128x32xf32>
      %c0_36 = arith.constant 0 : index
      %c0_37 = arith.constant 0 : index
      %41 = vector.load %arg9[%c0_36, %c0_37] : memref<128x32xf32, #tpu.memory_space<vmem>>, vector<128x32xf32>
      tpu.vector_store %arg9[%c0_36, %c0_37], %40 {strides = array<i32>} : memref<128x32xf32, #tpu.memory_space<vmem>>, vector<128x32xf32>,
    } else {
    }
    %c0 = arith.constant 0 : index
    %c0_1 = arith.constant 0 : index
    %c0_2 = arith.constant 0 : index
    %c0_3 = arith.constant 0 : index
    %3 = vector.load %arg3[%c0, %c0_1, %c0_2, %c0_3] : memref<1x1x128x32xbf16, #tpu.memory_space<vmem>>, vector<1x1x128x32xbf16>
    %4 = vector.shape_cast %3 : vector<1x1x128x32xbf16> to vector<128x32xbf16>
    %c0_4 = arith.constant 0 : index
    %c0_5 = arith.constant 0 : index
    %c0_6 = arith.constant 0 : index
    %c0_7 = arith.constant 0 : index
    %5 = vector.load %arg4[%c0_4, %c0_5, %c0_6, %c0_7] : memref<1x1x128x32xbf16, #tpu.memory_space<vmem>>, vector<1x1x128x32xbf16>
    %6 = vector.shape_cast %5 : vector<1x1x128x32xbf16> to vector<128x32xbf16>
    %c0_8 = arith.constant 0 : index
    %c0_9 = arith.constant 0 : index
    %c0_10 = arith.constant 0 : index
    %c0_11 = arith.constant 0 : index
    %7 = vector.load %arg5[%c0_8, %c0_9, %c0_10, %c0_11] : memref<1x1x128x32xbf16, #tpu.memory_space<vmem>>, vector<1x1x128x32xbf16>
    %8 = vector.shape_cast %7 : vector<1x1x128x32xbf16> to vector<128x32xbf16>
    %cst = arith.constant dense<0.000000e+00> : vector<128x128xf32>
    %9 = tpu.matmul %4, %6, %cst {dimension_numbers = #tpu.dot_dimension_numbers<[1], [1], [0], [0], [0, 0, 1, 0], [], []>} : vector<128x32xbf16>, vector<128x32xbf16>, vector<128x128xf32> -> vector<128x128xf32>
    %c0_12 = arith.constant 0 : index
    %c0_13 = arith.constant 0 : index
    %10 = vector.load %arg7[%c0_12, %c0_13] : memref<128x1xf32, #tpu.memory_space<vmem>>, vector<128x1xf32>
    %cst_14 = arith.constant dense<0xFF800000> : vector<128xf32>
    %11 = vector.multi_reduction <maximumf>, %9, %cst_14 [1] : vector<128x128xf32> to vector<128xf32>
    %12 = vector.shape_cast %11 : vector<128xf32> to vector<128x1xf32>
    %13 = arith.maximumf %10, %12 : vector<128x1xf32>
    %14 = arith.subf %10, %13 : vector<128x1xf32>
    %15 = math.exp %14 : vector<128x1xf32>
    %16 = vector.broadcast %13 : vector<128x1xf32> to vector<128x128xf32>
    %17 = arith.subf %9, %16 : vector<128x128xf32>
    %18 = math.exp %17 : vector<128x128xf32>
    %c0_15 = arith.constant 0 : index
    %c0_16 = arith.constant 0 : index
    %19 = vector.load %arg8[%c0_15, %c0_16] : memref<128x1xf32, #tpu.memory_space<vmem>>, vector<128x1xf32>
    %20 = arith.mulf %15, %19 : vector<128x1xf32>
    %cst_17 = arith.constant dense<0.000000e+00> : vector<128xf32>
    %21 = vector.multi_reduction <add>, %18, %cst_17 [1] : vector<128x128xf32> to vector<128xf32>
    %22 = vector.shape_cast %21 : vector<128xf32> to vector<128x1xf32>
    %23 = arith.addf %20, %22 : vector<128x1xf32>
    %c0_18 = arith.constant 0 : index
    %c0_19 = arith.constant 0 : index
    %24 = vector.load %arg8[%c0_18, %c0_19] : memref<128x1xf32, #tpu.memory_space<vmem>>, vector<128x1xf32>
    tpu.vector_store %arg8[%c0_18, %c0_19], %23 {strides = array<i32>} : memref<128x1xf32, #tpu.memory_space<vmem>>, vector<128x1xf32>,
    %c0_20 = arith.constant 0 : index
    %c0_21 = arith.constant 0 : index
    %25 = vector.load %arg9[%c0_20, %c0_21] : memref<128x32xf32, #tpu.memory_space<vmem>>, vector<128x32xf32>
    %26 = vector.broadcast %15 : vector<128x1xf32> to vector<128x32xf32>
    %27 = arith.mulf %26, %25 : vector<128x32xf32>
    %28 = arith.truncf %18 : vector<128x128xf32> to vector<128x128xbf16>
    %cst_22 = arith.constant dense<0.000000e+00> : vector<128x32xf32>
    %29 = tpu.matmul %28, %8, %cst_22 {dimension_numbers = #tpu.dot_dimension_numbers<[1], [0], [0], [1], [0, 0, 1, 1], [], []>} : vector<128x128xbf16>, vector<128x32xbf16>, vector<128x32xf32> -> vector<128x32xf32>
    %30 = arith.addf %27, %29 : vector<128x32xf32>
    %c0_23 = arith.constant 0 : index
    %c0_24 = arith.constant 0 : index
    %31 = vector.load %arg9[%c0_23, %c0_24] : memref<128x32xf32, #tpu.memory_space<vmem>>, vector<128x32xf32>
    tpu.vector_store %arg9[%c0_23, %c0_24], %30 {strides = array<i32>} : memref<128x32xf32, #tpu.memory_space<vmem>>, vector<128x32xf32>,
    %c0_25 = arith.constant 0 : index
    %c0_26 = arith.constant 0 : index
    %32 = vector.load %arg7[%c0_25, %c0_26] : memref<128x1xf32, #tpu.memory_space<vmem>>, vector<128x1xf32>
    tpu.vector_store %arg7[%c0_25, %c0_26], %13 {strides = array<i32>} : memref<128x1xf32, #tpu.memory_space<vmem>>, vector<128x1xf32>,
    %c0_i32_27 = arith.constant 0 : i32
    %33 = arith.cmpi eq, %arg2, %c0_i32_27 : i32
    %34 = arith.extui %33 : i1 to i32
    %c0_i32_28 = arith.constant 0 : i32
    %35 = arith.cmpi ne, %34, %c0_i32_28 : i32
    scf.if %35 {
      %c0_29 = arith.constant 0 : index
      %c0_30 = arith.constant 0 : index
      %36 = vector.load %arg8[%c0_29, %c0_30] : memref<128x1xf32, #tpu.memory_space<vmem>>, vector<128x1xf32>
      %37 = tpu.reciprocal %36 {approx = true} : vector<128x1xf32> -> vector<128x1xf32>
      %c0_31 = arith.constant 0 : index
      %c0_32 = arith.constant 0 : index
      %38 = vector.load %arg9[%c0_31, %c0_32] : memref<128x32xf32, #tpu.memory_space<vmem>>, vector<128x32xf32>
      %39 = vector.broadcast %37 : vector<128x1xf32> to vector<128x32xf32>
      %40 = arith.mulf %38, %39 : vector<128x32xf32>
      %c0_33 = arith.constant 0 : index
      %c0_34 = arith.constant 0 : index
      %c0_35 = arith.constant 0 : index
      %41 = vector.load %arg6[%c0_33, %c0_34, %c0_35] : memref<1x128x32xf32, #tpu.memory_space<vmem>>, vector<1x128x32xf32>
      %42 = vector.shape_cast %41 : vector<1x128x32xf32> to vector<128x32xf32>
      %43 = vector.shape_cast %40 : vector<128x32xf32> to vector<1x128x32xf32>
      tpu.vector_store %arg6[%c0_33, %c0_34, %c0_35], %43 {strides = array<i32>} : memref<1x128x32xf32, #tpu.memory_space<vmem>>, vector<1x128x32xf32>,
    } else {
    }
    return
  }
  func.func @transform_0(%arg0: i32, %arg1: i32, %arg2: i32) -> (i32, i32, i32, i32) {
    %c0_i32 = arith.constant 0 : i32
    %c0_i32_0 = arith.constant 0 : i32
    %c0_i32_1 = arith.constant 0 : i32
    return %c0_i32, %arg0, %arg1, %c0_i32_0 : i32, i32, i32, i32
  }
  func.func @transform_1(%arg0: i32, %arg1: i32, %arg2: i32) -> (i32, i32, i32, i32) {
    %c1_i32 = arith.constant 1 : i32
    %c0_i32 = arith.constant 0 : i32
    %c0_i32_0 = arith.constant 0 : i32
    return %c1_i32, %arg0, %arg2, %c0_i32 : i32, i32, i32, i32
  }
  func.func @transform_2(%arg0: i32, %arg1: i32, %arg2: i32) -> (i32, i32, i32, i32) {
    %c2_i32 = arith.constant 2 : i32
    %c0_i32 = arith.constant 0 : i32
    %c0_i32_0 = arith.constant 0 : i32
    return %c2_i32, %arg0, %arg2, %c0_i32 : i32, i32, i32, i32
  }
  func.func @transform_3(%arg0: i32, %arg1: i32, %arg2: i32) -> (i32, i32, i32) {
    %c0_i32 = arith.constant 0 : i32
    %c0_i32_0 = arith.constant 0 : i32
    return %arg0, %arg1, %c0_i32 : i32, i32, i32
  }
}

</mosaic_0001>

<bundles_post_ra>
// kernel: tpu_custom_call.1
= control target key start
LH: loop header
LB: loop body
LE: loop exit
PB: predicated region body
PF: predicated region fallthrough
CT: control target
= control target key end

     0   :  { %s1952_s12 = smov 0   ;;  %s1954_s13 = smov 0   ;;  %s2488_s0 = inlined_call_operand.vmem [shape: bf16[3,4,128,32], index: 0, kind: input, shape index: {}]   ;;  %s2489_s1 = inlined_call_operand.vmem [shape: bf16[3,4,128,32], index: 1, kind: input, shape index: {}]   ;;  %s2490_s2 = inlined_call_operand.vmem [shape: bf16[3,4,128,32], index: 2, kind: input, shape index: {}]   ;;  %s2491_s3 = inlined_call_operand.vmem [shape: f32[4,128,32], index: 3, kind: output, shape index: {}]  }
   0x1   :  { %s1956_s14 = smov 0  }
   0x2 LB: > { %s32_s15 = sadd.s32 1, %s1923_s13  ;;  %p1573_p0 = scmp.ge.s32.totalorder %s1927_s14, 1  ;;  %s1927_s14 = sphi %s1956_s14, %s13_s14   ;;  %s1923_s13 = sphi %s1954_s13, %s2507_s13   ;;  %s1919_s12 = sphi %s1952_s12, %s2506_s12  }
   0x3   : > { %p34_p1 = scmp.ge.s32.totalorder %s32_s15, 4  ;;  %p201_p2 = scmp.lt.s32.totalorder %s1927_s14, 5 }
   0x5   : > { %s2509_s15 = smov (%p34_p1, %s32_s15), 0  ;;  %p202_p3 = pnand %p1573_p0, %p201_p2 }
   0x6   : > { %p254_p4 = scmp.lt.s32.totalorder (!%p202_p3), %s1919_s12, 3  ;;  %vm333_vm0 = vcmask (!%p202_p3), 261120   ;;  %vm300_vm1 = vcmask (!%p202_p3), 7168   ;;  %v1929_v24 = vmov (!%p202_p3), -inf   ;;  %v1930_v34 = vmov (!%p202_p3), 0  }
   0x7   : > { %205 = sbr.rel (%p202_p3) target bundleno = 925 (0x39d), region = 32  ;;  %303 = vst.msk [vmem:[#allocation2 + $0x10] sm:$0xff] (!%p202_p3), %vm300_vm1, %v1929_v24  ;;  %301 = vst.msk [vmem:[#allocation2] sm:$0xff] (!%p202_p3), %vm300_vm1, %v1929_v24  ;;  %1784 = vset.pattern.permute.xlu1 (!%p202_p3), %v1930_v34  ;;  %1783 = vset.pattern.permute.xlu0 (!%p202_p3), %v1930_v34  ;;  %v1931_v39 = vmov (!%p202_p3), 0.0  }
   0x8   : > { %302 = vst.msk [vmem:[#allocation2 + $0x8] sm:$0xff] (!%p202_p3), %vm300_vm1, %v1929_v24  ;;  %304 = vst.msk [vmem:[#allocation2 + $0x18] sm:$0xff] (!%p202_p3), %vm300_vm1, %v1929_v24 }
   0x9   : > { %305 = vst.msk [vmem:[#allocation2 + $0x20] sm:$0xff] (!%p202_p3), %vm300_vm1, %v1929_v24  ;;  %306 = vst.msk [vmem:[#allocation2 + $0x28] sm:$0xff] (!%p202_p3), %vm300_vm1, %v1929_v24 }
   0xa   : > { %307 = vst.msk [vmem:[#allocation2 + $0x30] sm:$0xff] (!%p202_p3), %vm300_vm1, %v1929_v24  ;;  %308 = vst.msk [vmem:[#allocation2 + $0x38] sm:$0xff] (!%p202_p3), %vm300_vm1, %v1929_v24 }
   0xb   : > { %309 = vst.msk [vmem:[#allocation2 + $0x40] sm:$0xff] (!%p202_p3), %vm300_vm1, %v1929_v24  ;;  %310 = vst.msk [vmem:[#allocation2 + $0x48] sm:$0xff] (!%p202_p3), %vm300_vm1, %v1929_v24 }
   0xc   : > { %311 = vst.msk [vmem:[#allocation2 + $0x50] sm:$0xff] (!%p202_p3), %vm300_vm1, %v1929_v24  ;;  %312 = vst.msk [vmem:[#allocation2 + $0x58] sm:$0xff] (!%p202_p3), %vm300_vm1, %v1929_v24 }
   0xd   : > { %313 = vst.msk [vmem:[#allocation2 + $0x60] sm:$0xff] (!%p202_p3), %vm300_vm1, %v1929_v24  ;;  %314 = vst.msk [vmem:[#allocation2 + $0x68] sm:$0xff] (!%p202_p3), %vm300_vm1, %v1929_v24 }
   0xe   : > { %s2511_s12 = smov (!%p254_p4, %s1919_s12), 3  ;;  %315 = vst.msk [vmem:[#allocation2 + $0x70] sm:$0xff] %vm300_vm1, %v1929_v24  ;;  %316 = vst.msk [vmem:[#allocation2 + $0x78] sm:$0xff] %vm300_vm1, %v1929_v24  ;;  %v2131_v45 = vld [vmem:[#allocation2 + $0x10] sm:$0xff]  ;;  %v2133_v46 = vld [vmem:[#allocation2] sm:$0xff] }
   0xf   : > { %s1973_s16 = sshll.u32 %s2511_s12, 6  ;;  %319 = vst.msk [vmem:[#allocation3 + $0x10] sm:$0xff] %vm300_vm1, %v1931_v39  ;;  %317 = vst.msk [vmem:[#allocation3] sm:$0xff] %vm300_vm1, %v1931_v39  ;;  %v2141_v51 = vld [vmem:[#allocation2 + $0x18] sm:$0xff]  ;;  %v2148_v53 = vld [vmem:[#allocation2 + $0x8] sm:$0xff]  ;;  %s1651_s26 = sshll.u32 %s2511_s12, 7 }
  0x10   : > { %s1979_s19 = scalar_lea.vmem %s2489_s1, %s1973_s16  ;;  %s1990_s22 = scalar_lea.vmem %s2488_s0, %s1973_s16  ;;  %318 = vst.msk [vmem:[#allocation3 + $0x8] sm:$0xff] %vm300_vm1, %v1931_v39  ;;  %320 = vst.msk [vmem:[#allocation3 + $0x18] sm:$0xff] %vm300_vm1, %v1931_v39  ;;  %v2167_v61 = vld [vmem:[#allocation2 + $0x20] sm:$0xff] }
  0x11   : > { %v1785_v0 = vld [vmem:[%s1979_s19 + $0x100] sm:$0xff]   ;;  %v1786_v1 = vld [vmem:[%s1979_s19 + $0x108] sm:$0xff]   ;;  %v1787_v3 = vld [vmem:[%s1979_s19 + $0x110] sm:$0xff]   ;;  %321 = vst.msk [vmem:[#allocation3 + $0x20] sm:$0xff] %vm300_vm1, %v1931_v39  ;;  %s2127_s25 = scalar_lea.vmem %s2490_s2, %s1973_s16  ;;  %s2445_s29 = scalar_lea.vmem %s2491_s3, %s1651_s26 }
  0x12   : > { %1748 = vmatprep.subr.msk.bf16.mxu0 %vm333_vm0, %v1785_v0  ;;  %v504_v2 = vsel %vm333_vm0, %v1785_v0, 0  ;;  %v507_v4 = vsel %vm333_vm0, %v1786_v1, 0  ;;  %v1793_v5 = vld [vmem:[%s1990_s22] sm:$0xff]   ;;  %v510_v6 = vsel %vm333_vm0, %v1787_v3, 0  ;;  %v1788_v7 = vld [vmem:[%s1979_s19 + $0x118] sm:$0xff]   ;;  %v1790_v11 = vld [vmem:[%s1979_s19 + $0x128] sm:$0xff]  }
  0x13   : > { %1685 = vmatpush3.bf16.xpose.msra.mxu0 %v504_v2  ;;  %1700 = vmatprep.mubr.msk.bf16.mxu0 %vm333_vm0, %v1793_v5  ;;  %v513_v8 = vsel %vm333_vm0, %v1788_v7, 0  ;;  %v1789_v9 = vld [vmem:[%s1979_s19 + $0x120] sm:$0xff]   ;;  %v519_v12 = vsel %vm333_vm0, %v1790_v11, 0  ;;  %v1791_v13 = vld [vmem:[%s1979_s19 + $0x130] sm:$0xff]   ;;  %v1792_v15 = vld [vmem:[%s1979_s19 + $0x138] sm:$0xff]   ;;  %322 = vst.msk [vmem:[#allocation3 + $0x28] sm:$0xff] %vm300_vm1, %v1931_v39 }
  0x14   : > { %1749 = vmatprep.subr.msk.bf16.mxu0 %vm333_vm0, %v1786_v1  ;;  %v516_v10 = vsel %vm333_vm0, %v1789_v9, 0  ;;  %v522_v14 = vsel %vm333_vm0, %v1791_v13, 0  ;;  %v525_v16 = vsel %vm333_vm0, %v1792_v15, 0  ;;  %v1794_v17 = vld [vmem:[%s1990_s22 + $0x8] sm:$0xff]   ;;  %v1795_v18 = vld [vmem:[%s1990_s22 + $0x10] sm:$0xff]   ;;  %v1796_v19 = vld [vmem:[%s1990_s22 + $0x18] sm:$0xff]  }
  0x15   : > { %v1797_v20 = vld [vmem:[%s1990_s22 + $0x20] sm:$0xff]   ;;  %v1798_v21 = vld [vmem:[%s1990_s22 + $0x28] sm:$0xff]   ;;  %v1799_v22 = vld [vmem:[%s1990_s22 + $0x30] sm:$0xff]   ;;  %323 = vst.msk [vmem:[#allocation3 + $0x30] sm:$0xff] %vm300_vm1, %v1931_v39 }
  0x16   : > { %v1800_v23 = vld [vmem:[%s1990_s22 + $0x38] sm:$0xff]   ;;  %324 = vst.msk [vmem:[#allocation3 + $0x38] sm:$0xff] %vm300_vm1, %v1931_v39  ;;  %325 = vst.msk [vmem:[#allocation3 + $0x40] sm:$0xff] %vm300_vm1, %v1931_v39  ;;  %v1801_v43 = vld [vmem:[%s2127_s25 + $0x200] sm:$0xff]  }
  0x17   : > { %326 = vst.msk [vmem:[#allocation3 + $0x48] sm:$0xff] %vm300_vm1, %v1931_v39  ;;  %327 = vst.msk [vmem:[#allocation3 + $0x50] sm:$0xff] %vm300_vm1, %v1931_v39  ;;  %v1802_v44 = vld [vmem:[%s2127_s25 + $0x208] sm:$0xff]   ;;  %1716 = vmatprep.subr.bf16.mxu1 %v1801_v43  ;;  %v1803_v54 = vld [vmem:[%s2127_s25 + $0x210] sm:$0xff]  }
  0x18   : > { %328 = vst.msk [vmem:[#allocation3 + $0x58] sm:$0xff] %vm300_vm1, %v1931_v39  ;;  %329 = vst.msk [vmem:[#allocation3 + $0x60] sm:$0xff] %vm300_vm1, %v1931_v39  ;;  %1717 = vmatpush3.bf16.msra.mxu1 %v1801_v43  ;;  %v1804_v62 = vld [vmem:[%s2127_s25 + $0x218] sm:$0xff]   ;;  %v2183_v5 = vld [vmem:[#allocation2 + $0x30] sm:$0xff] }
  0x19   : > { %330 = vst.msk [vmem:[#allocation3 + $0x68] sm:$0xff] %vm300_vm1, %v1931_v39  ;;  %331 = vst.msk [vmem:[#allocation3 + $0x70] sm:$0xff] %vm300_vm1, %v1931_v39  ;;  %1718 = vmatprep.subr.bf16.mxu1 %v1802_v44  ;;  %v2174_v0 = vld [vmem:[#allocation2 + $0x38] sm:$0xff]  ;;  %v1807_v24 = vld [vmem:[%s2127_s25 + $0x230] sm:$0xff]  }
  0x1a   : > { %332 = vst.msk [vmem:[#allocation3 + $0x78] sm:$0xff] %vm300_vm1, %v1931_v39 }
  0x1b   : > { %1687 = vmatpush3.bf16.xpose.msra.mxu0 %v507_v4  ;;  %334 = vst.msk [vmem:[#allocation4] sm:$0xff] %vm333_vm0, %v1931_v39  ;;  %335 = vst.msk [vmem:[#allocation4 + $0x8] sm:$0xff] %vm333_vm0, %v1931_v39 }
  0x1c   : > { %1750 = vmatprep.subr.msk.bf16.mxu0 %vm333_vm0, %v1787_v3  ;;  %336 = vst.msk [vmem:[#allocation4 + $0x10] sm:$0xff] %vm333_vm0, %v1931_v39  ;;  %337 = vst.msk [vmem:[#allocation4 + $0x18] sm:$0xff] %vm333_vm0, %v1931_v39  ;;  %1719 = vmatpush3.bf16.msra.mxu1 %v1802_v44 }
  0x1d   : > { %338 = vst.msk [vmem:[#allocation4 + $0x20] sm:$0xff] %vm333_vm0, %v1931_v39  ;;  %339 = vst.msk [vmem:[#allocation4 + $0x28] sm:$0xff] %vm333_vm0, %v1931_v39  ;;  %1720 = vmatprep.subr.bf16.mxu1 %v1803_v54 }
  0x1e   : > { %340 = vst.msk [vmem:[#allocation4 + $0x30] sm:$0xff] %vm333_vm0, %v1931_v39  ;;  %341 = vst.msk [vmem:[#allocation4 + $0x38] sm:$0xff] %vm333_vm0, %v1931_v39 }
  0x1f   : > { %342 = vst.msk [vmem:[#allocation4 + $0x40] sm:$0xff] %vm333_vm0, %v1931_v39  ;;  %343 = vst.msk [vmem:[#allocation4 + $0x48] sm:$0xff] %vm333_vm0, %v1931_v39 }
  0x20   : > { %344 = vst.msk [vmem:[#allocation4 + $0x50] sm:$0xff] %vm333_vm0, %v1931_v39  ;;  %345 = vst.msk [vmem:[#allocation4 + $0x58] sm:$0xff] %vm333_vm0, %v1931_v39  ;;  %1721 = vmatpush3.bf16.msra.mxu1 %v1803_v54 }
  0x21   : > { %346 = vst.msk [vmem:[#allocation4 + $0x60] sm:$0xff] %vm333_vm0, %v1931_v39  ;;  %347 = vst.msk [vmem:[#allocation4 + $0x68] sm:$0xff] %vm333_vm0, %v1931_v39  ;;  %1722 = vmatprep.subr.bf16.mxu1 %v1804_v62 }
  0x22   : > { %348 = vst.msk [vmem:[#allocation4 + $0x70] sm:$0xff] %vm333_vm0, %v1931_v39  ;;  %349 = vst.msk [vmem:[#allocation4 + $0x78] sm:$0xff] %vm333_vm0, %v1931_v39  ;;  %v2230_v39 = vld [vmem:[#allocation2 + $0x48] sm:$0xff] }
  0x23   : > { %1689 = vmatpush3.bf16.xpose.msra.mxu0 %v510_v6  ;;  %v1805_v6 = vld [vmem:[%s2127_s25 + $0x220] sm:$0xff]  }
  0x24   : > { %1751 = vmatprep.subr.msk.bf16.mxu0 %vm333_vm0, %v1788_v7  ;;  %1723 = vmatpush3.bf16.msra.mxu1 %v1804_v62 }
  0x25   : > { %1724 = vmatprep.subr.bf16.mxu1 %v1805_v6 }
  0x28   : > { %1725 = vmatpush3.bf16.msra.mxu1 %v1805_v6 }
  0x2b   : > { %1691 = vmatpush3.bf16.xpose.msra.mxu0 %v513_v8  ;;  %v2190_v8 = vld [vmem:[#allocation2 + $0x28] sm:$0xff] }
  0x2c   : > { %1752 = vmatprep.subr.msk.bf16.mxu0 %vm333_vm0, %v1789_v9 }
  0x33   : > { %1693 = vmatpush3.bf16.xpose.msra.mxu0 %v516_v10 }
  0x34   : > { %1753 = vmatprep.subr.msk.bf16.mxu0 %vm333_vm0, %v1790_v11 }
  0x3b   : > { %1695 = vmatpush3.bf16.xpose.msra.mxu0 %v519_v12 }
  0x3c   : > { %1754 = vmatprep.subr.msk.bf16.mxu0 %vm333_vm0, %v1791_v13 }
  0x43   : > { %1697 = vmatpush3.bf16.xpose.msra.mxu0 %v522_v14  ;;  %v2202_v14 = vld [vmem:[#allocation2 + $0x40] sm:$0xff] }
  0x44   : > { %1755 = vmatprep.subr.msk.bf16.mxu0 %vm333_vm0, %v1792_v15  ;;  %v1806_v15 = vld [vmem:[%s2127_s25 + $0x228] sm:$0xff]  }
  0x45   : > { %1726 = vmatprep.subr.bf16.mxu1 %v1806_v15 }
  0x46   : > { %1727 = vmatpush3.bf16.msra.mxu1 %v1806_v15 }
  0x47   : > { %1728 = vmatprep.subr.bf16.mxu1 %v1807_v24 }
  0x4a   : > { %1729 = vmatpush3.bf16.msra.mxu1 %v1807_v24  ;;  %v2270_v24 = vld [vmem:[#allocation2 + $0x68] sm:$0xff] }
  0x4b   : > { %1699 = vmatpush3.bf16.xpose.msra.mxu0 %v525_v16 }
  0x52   : > { %1701 = vmatmul.mubr.msk.bf16.vlgmr.msra.gmra.mrb[0].mxu0 %vm333_vm0, %v1794_v17  ;;  %v2210_v17 = vld [vmem:[#allocation2 + $0x58] sm:$0xff] }
  0x53   : > { %1704 = vmatprep.mubr.msk.bf16.mxu0 %vm333_vm0, %v1795_v18 }
  0x5a   : > { %1705 = vmatmul.mubr.msk.bf16.gmra.mrb[4].mxu0 %vm333_vm0, %v1796_v19 }
  0x5b   : > { %1708 = vmatprep.mubr.msk.bf16.mxu0 %vm333_vm0, %v1797_v20 }
  0x62   : > { %1709 = vmatmul.mubr.msk.bf16.gmra.mrb[8].mxu0 %vm333_vm0, %v1798_v21 }
  0x63   : > { %1712 = vmatprep.mubr.msk.bf16.mxu0 %vm333_vm0, %v1799_v22 }
  0x6a   : > { %1713 = vmatmul.mubr.msk.bf16.gmra.mrb[12].mxu0 %vm333_vm0, %v1800_v23  ;;  %v2222_v23 = vld [vmem:[#allocation2 + $0x50] sm:$0xff] }
 0x125   : > { %v2043_v25 = vpop.f32.mrb[0].mxu0 }
 0x126   : > { %644 = vmax.xlane.f32.xlu1 %v2043_v25  ;;  %v2046_v26 = vpop.f32.mrb[1].mxu0 }
 0x127   : > { %640 = vmax.xlane.f32.xlu0 %v2046_v26  ;;  %v2049_v27 = vpop.f32.mrb[2].mxu0 }
 0x128   : > { %v2051_v28 = vpop.f32.mrb[3].mxu0 }
 0x12a   : > { %646 = vmax.xlane.f32.xlu1 %v2049_v27 }
 0x12b   : > { %642 = vmax.xlane.f32.xlu0 %v2051_v28 }
 0x12d   : > { %v2055_v29 = vpop.f32.mrb[4].mxu0 }
 0x12e   : > { %v2057_v30 = vpop.f32.mrb[5].mxu0 }
 0x12f   : > { %648 = vmax.xlane.f32.xlu0 %v2057_v30  ;;  %v2060_v31 = vpop.f32.mrb[6].mxu0 }
 0x130   : > { %654 = vmax.xlane.f32.xlu1 %v2060_v31  ;;  %v2063_v32 = vpop.f32.mrb[7].mxu0 }
 0x133   : > { %652 = vmax.xlane.f32.xlu0 %v2055_v29 }
 0x134   : > { %650 = vmax.xlane.f32.xlu1 %v2063_v32 }
 0x135   : > { %v2067_v33 = vpop.f32.mrb[8].mxu0 }
 0x136   : > { %v2069_v35 = vpop.f32.mrb[9].mxu0 }
 0x137   : > { %v2071_v36 = vpop.f32.mrb[10].mxu0  ;;  %656 = vmax.xlane.f32.xlu0 %v2069_v35 }
 0x138   : > { %662 = vmax.xlane.f32.xlu1 %v2071_v36  ;;  %v2075_v37 = vpop.f32.mrb[11].mxu0 }
 0x13b   : > { %660 = vmax.xlane.f32.xlu0 %v2067_v33 }
 0x13c   : > { %658 = vmax.xlane.f32.xlu1 %v2075_v37 }
 0x13d   : > { %v2079_v38 = vpop.f32.mrb[12].mxu0 }
 0x13e   : > { %v2113_v40 = vpop.f32.mrb[13].mxu0 }
 0x13f   : > { %v2115_v41 = vpop.f32.mrb[14].mxu0  ;;  %664 = vmax.xlane.f32.xlu0 %v2113_v40 }
 0x140   : > { %670 = vmax.xlane.f32.xlu1 %v2115_v41  ;;  %v2119_v42 = vpop.f32.mrb[15].mxu0 }
 0x143   : > { %668 = vmax.xlane.f32.xlu0 %v2079_v38 }
 0x144   : > { %666 = vmax.xlane.f32.xlu1 %v2119_v42 }
 0x1b3   : > { %v645_v47 = vpop.xlane.xlu1 %644 }
 0x1b4   : > { %v2136_v48 = vmax.f32 %v2131_v45, %v645_v47  ;;  %v641_v49 = vpop.xlane.xlu0 %640 }
 0x1b5   : > { %v2139_v50 = vmax.f32 %v2133_v46, %v641_v49 }
 0x1b6   : > { %v690_v52 = vsub.f32 %v2131_v45, %v2136_v48  ;;  %1260 = vst.msk [vmem:[#allocation2 + $0x10] sm:$0xff] %vm300_vm1, %v2136_v48  ;;  %748 = vperm.xlu1 %1784, %v2136_v48  }
 0x1b7   : > { %1258 = vst.msk [vmem:[#allocation2] sm:$0xff] %vm300_vm1, %v2139_v50  ;;  %v647_v56 = vpop.xlane.xlu1 %646  ;;  %738 = vperm.xlu0 %1783, %v2139_v50  }
 0x1b8   : > { %v2157_v57 = vmax.f32 %v2141_v51, %v647_v56  ;;  %v643_v58 = vpop.xlane.xlu0 %642  ;;  %v2242_v56 = vld [vmem:[#allocation2 + $0x60] sm:$0xff] }
 0x1b9   : > { %v2160_v59 = vmax.f32 %v2148_v53, %v643_v58  ;;  %v1808_v58 = vld [vmem:[%s2127_s25 + $0x238] sm:$0xff]  }
 0x1ba   : > { %1261 = vst.msk [vmem:[#allocation2 + $0x18] sm:$0xff] %vm300_vm1, %v2157_v57  ;;  %753 = vperm.xlu1 %1784, %v2157_v57   ;;  %1730 = vmatprep.subr.bf16.mxu1 %v1808_v58 }
 0x1bb   : > { %v689_v63 = vsub.f32 %v2148_v53, %v2160_v59  ;;  %1259 = vst.msk [vmem:[#allocation2 + $0x8] sm:$0xff] %vm300_vm1, %v2160_v59  ;;  %1731 = vmatpush3.bf16.msra.mxu1 %v1808_v58 }
 0x1bc   : > { %v649_v1 = vpop.xlane.xlu0 %648 }
 0x1bd   : > { %v2177_v2 = vmax.f32 %v2167_v61, %v649_v1  ;;  %v655_v3 = vpop.xlane.xlu1 %654  ;;  %v2250_v1 = vld [vmem:[#allocation2 + $0x78] sm:$0xff] }
 0x1be   : > { %v2180_v4 = vmax.f32 %v2174_v0, %v655_v3  ;;  %743 = vperm.xlu1 %1784, %v2160_v59  }
 0x1bf   : > { %1262 = vst.msk [vmem:[#allocation2 + $0x20] sm:$0xff] %vm300_vm1, %v2177_v2 }
 0x1c0   : > { %1265 = vst.msk [vmem:[#allocation2 + $0x38] sm:$0xff] %vm300_vm1, %v2180_v4  ;;  %v653_v10 = vpop.xlane.xlu0 %652 }
 0x1c1   : > { %v2197_v11 = vmax.f32 %v2183_v5, %v653_v10  ;;  %v651_v12 = vpop.xlane.xlu1 %650 }
 0x1c2   : > { %v2200_v13 = vmax.f32 %v2190_v8, %v651_v12 }
 0x1c3   : > { %1264 = vst.msk [vmem:[#allocation2 + $0x30] sm:$0xff] %vm300_vm1, %v2197_v11  ;;  %768 = vperm.xlu1 %1784, %v2197_v11   ;;  %v2495_v45 = vsub.f32 %v2183_v5, %v2197_v11 }
 0x1c4   : > { %1263 = vst.msk [vmem:[#allocation2 + $0x28] sm:$0xff] %vm300_vm1, %v2200_v13  ;;  %v657_v19 = vpop.xlane.xlu0 %656 }
 0x1c5   : > { %v663_v20 = vpop.xlane.xlu1 %662  ;;  %v2217_v21 = vmax.f32 %v2202_v14, %v657_v19  ;;  %v2263_v19 = vld [vmem:[#allocation2 + $0x70] sm:$0xff]  ;;  %v716_v48 = vmul.f32 1.442695, %v2495_v45 }
 0x1c6   : > { %v2220_v22 = vmax.f32 %v2210_v17, %v663_v20 }
 0x1c7   : > { %1266 = vst.msk [vmem:[#allocation2 + $0x40] sm:$0xff] %vm300_vm1, %v2217_v21  ;;  %758 = vperm.xlu1 %1784, %v2177_v2   ;;  %v2497_v59 = vsub.f32 %v2202_v14, %v2217_v21 }
 0x1c8   : > { %1269 = vst.msk [vmem:[#allocation2 + $0x58] sm:$0xff] %vm300_vm1, %v2220_v22  ;;  %v661_v44 = vpop.xlane.xlu0 %660 }
 0x1c9   : > { %v659_v47 = vpop.xlane.xlu1 %658  ;;  %v2237_v49 = vmax.f32 %v2222_v23, %v661_v44 }
 0x1ca   : > { %v2240_v54 = vmax.f32 %v2230_v39, %v659_v47 }
 0x1cb   : > { %1268 = vst.msk [vmem:[#allocation2 + $0x50] sm:$0xff] %vm300_vm1, %v2237_v49  ;;  %763 = vperm.xlu1 %1784, %v2200_v13   ;;  %v2499_v5 = vsub.f32 %v2222_v23, %v2237_v49  ;;  %v2502_v23 = vsub.f32 %v2210_v17, %v2220_v22 }
 0x1cc   : > { %1267 = vst.msk [vmem:[#allocation2 + $0x48] sm:$0xff] %vm300_vm1, %v2240_v54  ;;  %783 = vperm.xlu0 %1783, %v2240_v54   ;;  %v665_v6 = vpop.xlane.xlu0 %664  ;;  %v2500_v11 = vsub.f32 %v2230_v39, %v2240_v54 }
 0x1cd   : > { %v671_v10 = vpop.xlane.xlu1 %670  ;;  %v2258_v12 = vmax.f32 %v2242_v56, %v665_v6 }
 0x1ce   : > { %v2261_v15 = vmax.f32 %v2250_v1, %v671_v10 }
 0x1cf   : > { %1270 = vst.msk [vmem:[#allocation2 + $0x60] sm:$0xff] %vm300_vm1, %v2258_v12  ;;  %773 = vperm.xlu1 %1784, %v2180_v4  }
 0x1d0   : > { %1273 = vst.msk [vmem:[#allocation2 + $0x78] sm:$0xff] %vm300_vm1, %v2261_v15  ;;  %793 = vperm.xlu0 %1783, %v2220_v22   ;;  %v669_v47 = vpop.xlane.xlu0 %668  ;;  %v2505_v22 = vsub.f32 %v2250_v1, %v2261_v15 }
 0x1d1   : > { %v667_v58 = vpop.xlane.xlu1 %666  ;;  %v2278_v6 = vmax.f32 %v2263_v19, %v669_v47 }
 0x1d2   : > { %v2281_v10 = vmax.f32 %v2270_v24, %v667_v58 }
 0x1d3   : > { %1272 = vst.msk [vmem:[#allocation2 + $0x70] sm:$0xff] %vm300_vm1, %v2278_v6  ;;  %778 = vperm.xlu1 %1784, %v2217_v21   ;;  %v2503_v39 = vsub.f32 %v2263_v19, %v2278_v6  ;;  %v734_v19 = vmul.f32 1.442695, %v2505_v22 }
 0x1d4   : > { %1271 = vst.msk [vmem:[#allocation2 + $0x68] sm:$0xff] %vm300_vm1, %v2281_v10  ;;  %803 = vperm.xlu0 %1783, %v2281_v10  }
 0x1d5   : > { %v732_v54 = vmul.f32 1.442695, %v2503_v39  ;;  %v872_v39 = vld [vmem:[#allocation3 + $0x40] sm:$0xff] }
 0x1d7   : > { %788 = vperm.xlu1 %1784, %v2237_v49   ;;  %v726_v49 = vmul.f32 1.442695, %v2502_v23 }
 0x1d8   : > { %813 = vperm.xlu0 %1783, %v2261_v15  }
 0x1db   : > { %798 = vperm.xlu1 %1784, %v2258_v12  }
 0x1df   : > { %808 = vperm.xlu1 %1784, %v2278_v6  }
 0x235   : > { %v749_v47 = vpop.permute.xlu1 %748 }
 0x236   : > { %v818_v58 = vsub.f32 %v2043_v25, %v749_v47  ;;  %v739_v43 = vpop.permute.xlu0 %738 }
 0x237   : > { %v816_v20 = vsub.f32 %v2046_v26, %v739_v43 }
 0x238   : > { %v836_v44 = vmul.f32 1.442695, %v818_v58 }
 0x239   : > { %v832_v3 = vmul.f32 1.442695, %v816_v20  ;;  %v754_v62 = vpop.permute.xlu1 %753 }
 0x23a   : > { %1809 = vpow2.f32 %v836_v44  ;;  %v819_v9 = vsub.f32 %v2049_v27, %v754_v62 }
 0x23b   : > { %1811 = vpow2.f32 %v832_v3 }
 0x23c   : > { %v838_v34 = vmul.f32 1.442695, %v819_v9 }
 0x23d   : > { %v744_v18 = vpop.permute.xlu1 %743 }
 0x23e   : > { %1813 = vpow2.f32 %v838_v34  ;;  %v817_v16 = vsub.f32 %v2051_v28, %v744_v18 }
 0x240   : > { %v834_v60 = vmul.f32 1.442695, %v817_v16 }
 0x242   : > { %1815 = vpow2.f32 %v834_v60  ;;  %v769_v7 = vpop.permute.xlu1 %768 }
 0x243   : > { %v822_v25 = vsub.f32 %v2055_v29, %v769_v7 }
 0x244   : > { %v1810_v47 = vpop.eup %1809 }
 0x245   : > { %v1812_v55 = vpop.eup %1811  ;;  %v844_v26 = vmul.f32 1.442695, %v822_v25  ;;  %900 = vadd.xlane.f32.xlu0 %v1810_v47 }
 0x246   : > { %896 = vadd.xlane.f32.xlu1 %v1812_v55  ;;  %v759_v43 = vpop.permute.xlu1 %758 }
 0x247   : > { %1817 = vpow2.f32 %v844_v26  ;;  %v820_v27 = vsub.f32 %v2057_v30, %v759_v43 }
 0x248   : > { %v1814_v62 = vpop.eup %1813 }
 0x249   : > { %v840_v9 = vmul.f32 1.442695, %v820_v27  ;;  %v1074_v3 = vpack.c.bf16 %v1814_v62, %v1810_v47 }
 0x24a   : > { %902 = vadd.xlane.f32.xlu1 %v1814_v62  ;;  %v764_v34 = vpop.permute.xlu1 %763 }
 0x24b   : > { %1819 = vpow2.f32 %v840_v9  ;;  %v821_v28 = vsub.f32 %v2063_v32, %v764_v34  ;;  %v784_v60 = vpop.permute.xlu0 %783 }
 0x24c   : > { %v1816_v16 = vpop.eup %1815  ;;  %v825_v18 = vsub.f32 %v2075_v37, %v784_v60 }
 0x24d   : > { %v842_v29 = vmul.f32 1.442695, %v821_v28  ;;  %898 = vadd.xlane.f32.xlu0 %v1816_v16  ;;  %v1073_v7 = vpack.c.bf16 %v1816_v16, %v1812_v55 }
 0x24e   : > { %v774_v20 = vpop.permute.xlu1 %773  ;;  %v850_v47 = vmul.f32 1.442695, %v825_v18 }
 0x24f   : > { %1821 = vpow2.f32 %v842_v29  ;;  %v823_v44 = vsub.f32 %v2060_v31, %v774_v20  ;;  %v794_v30 = vpop.permute.xlu0 %793  ;;  %1732 = vmatprep.mubr.bf16.mxu1 %v1073_v7 }
 0x250   : > { %1733 = vmatmul.mubr.bf16.vlgmr.msra.gmra.mrb[0].mxu1 %v1074_v3  ;;  %v827_v26 = vsub.f32 %v2071_v36, %v794_v30 }
 0x251   : > { %v1818_v58 = vpop.eup %1817  ;;  %v846_v25 = vmul.f32 1.442695, %v823_v44 }
 0x252   : > { %908 = vadd.xlane.f32.xlu0 %v1818_v58  ;;  %v779_v32 = vpop.permute.xlu1 %778  ;;  %v854_v62 = vmul.f32 1.442695, %v827_v26 }
 0x253   : > { %1823 = vpow2.f32 %v846_v25  ;;  %v824_v43 = vsub.f32 %v2069_v35, %v779_v32  ;;  %v804_v55 = vpop.permute.xlu0 %803 }
 0x254   : > { %1825 = vpow2.f32 %v850_v47  ;;  %v829_v31 = vsub.f32 %v2119_v42, %v804_v55 }
 0x255   : > { %v1820_v27 = vpop.eup %1819  ;;  %v848_v37 = vmul.f32 1.442695, %v824_v43 }
 0x256   : > { %904 = vadd.xlane.f32.xlu0 %v1820_v27  ;;  %v789_v9 = vpop.permute.xlu1 %788  ;;  %v858_v60 = vmul.f32 1.442695, %v829_v31  ;;  %v706_v31 = vmul.f32 1.442695, %v689_v63 }
 0x257   : > { %1827 = vpow2.f32 %v848_v37  ;;  %v826_v3 = vsub.f32 %v2067_v33, %v789_v9  ;;  %v814_v34 = vpop.permute.xlu0 %813  ;;  %v708_v9 = vmul.f32 1.442695, %v690_v52 }
 0x258   : > { %1829 = vpow2.f32 %v854_v62  ;;  %v831_v16 = vsub.f32 %v2115_v41, %v814_v34 }
 0x259   : > { %v1822_v28 = vpop.eup %1821  ;;  %v852_v36 = vmul.f32 1.442695, %v826_v3  ;;  %v2492_v3 = vsub.f32 %v2133_v46, %v2139_v50  ;;  %v2496_v46 = vsub.f32 %v2190_v8, %v2200_v13  ;;  %v724_v8 = vmul.f32 1.442695, %v2499_v5 }
 0x25a   : > { %v799_v35 = vpop.permute.xlu1 %798  ;;  %v1075_v29 = vpack.c.bf16 %v1822_v28, %v1820_v27  ;;  %v862_v20 = vmul.f32 1.442695, %v831_v16  ;;  %v722_v13 = vmul.f32 1.442695, %v2500_v11 }
 0x25b   : > { %1831 = vpow2.f32 %v852_v36  ;;  %v828_v7 = vsub.f32 %v2113_v40, %v799_v35  ;;  %v704_v34 = vmul.f32 1.442695, %v2492_v3  ;;  %v714_v50 = vmul.f32 1.442695, %v2496_v46 }
 0x25c   : > { %1736 = vmatprep.mubr.bf16.mxu1 %v1075_v29  ;;  %1833 = vpow2.f32 %v858_v60  ;;  %v2494_v60 = vsub.f32 %v2141_v51, %v2157_v57  ;;  %v720_v51 = vmul.f32 1.442695, %v2497_v59  ;;  %v2498_v57 = vsub.f32 %v2174_v0, %v2180_v4 }
 0x25d   : > { %v1824_v18 = vpop.eup %1823  ;;  %v856_v42 = vmul.f32 1.442695, %v828_v7  ;;  %v2501_v0 = vsub.f32 %v2242_v56, %v2258_v12  ;;  %v2504_v56 = vsub.f32 %v2270_v24, %v2281_v10 }
 0x25e   : > { %910 = vadd.xlane.f32.xlu1 %v1824_v18  ;;  %v809_v44 = vpop.permute.xlu1 %808  ;;  %v1076_v33 = vpack.c.bf16 %v1824_v18, %v1818_v58  ;;  %v1826_v25 = vpop.eup %1825  ;;  %v710_v53 = vmul.f32 1.442695, %v2494_v60 }
 0x25f   : > { %1835 = vpow2.f32 %v856_v42  ;;  %v830_v30 = vsub.f32 %v2079_v38, %v809_v44  ;;  %v728_v4 = vmul.f32 1.442695, %v2501_v0  ;;  %v730_v12 = vmul.f32 1.442695, %v2504_v56  ;;  %v866_v42 = vld [vmem:[#allocation3 + $0x10] sm:$0xff] }
 0x260   : > { %1737 = vmatmul.mubr.bf16.gmra.mrb[4].mxu1 %v1076_v33  ;;  %1837 = vpow2.f32 %v862_v20  ;;  %v864_v20 = vld [vmem:[#allocation3] sm:$0xff] }
 0x261   : > { %v1828_v47 = vpop.eup %1827  ;;  %v860_v41 = vmul.f32 1.442695, %v830_v30 }
 0x262   : > { %906 = vadd.xlane.f32.xlu1 %v1822_v28  ;;  %v1077_v26 = vpack.c.bf16 %v1826_v25, %v1828_v47  ;;  %v1830_v40 = vpop.eup %1829  ;;  %v2493_v28 = vsub.f32 %v2167_v61, %v2177_v2  ;;  %v718_v61 = vmul.f32 1.442695, %v2498_v57 }
 0x263   : > { %1839 = vpow2.f32 %v860_v41  ;;  %v867_v41 = vld [vmem:[#allocation3 + $0x18] sm:$0xff] }
 0x264   : > { %1740 = vmatprep.mubr.bf16.mxu1 %v1077_v26  ;;  %1841 = vpow2.f32 %v706_v31  ;;  %v712_v36 = vmul.f32 1.442695, %v2493_v28 }
 0x265   : > { %v1832_v32 = vpop.eup %1831  ;;  %1843 = vpow2.f32 %v708_v9 }
 0x266   : > { %918 = vadd.xlane.f32.xlu1 %v1830_v40  ;;  %916 = vadd.xlane.f32.xlu0 %v1832_v32  ;;  %v1078_v43 = vpack.c.bf16 %v1830_v40, %v1832_v32  ;;  %v1834_v55 = vpop.eup %1833  ;;  %1845 = vpow2.f32 %v704_v34  ;;  %v865_v32 = vld [vmem:[#allocation3 + $0x8] sm:$0xff]  ;;  %v868_v34 = vld [vmem:[#allocation3 + $0x20] sm:$0xff] }
 0x267   : > { %1847 = vpow2.f32 %v712_v36 }
 0x268   : > { %1741 = vmatmul.mubr.bf16.gmra.mrb[8].mxu1 %v1078_v43  ;;  %1849 = vpow2.f32 %v710_v53 }
 0x269   : > { %v1836_v58 = vpop.eup %1835  ;;  %1851 = vpow2.f32 %v716_v48 }
 0x26a   : > { %914 = vadd.xlane.f32.xlu1 %v1826_v25  ;;  %912 = vadd.xlane.f32.xlu0 %v1828_v47  ;;  %v1079_v38 = vpack.c.bf16 %v1834_v55, %v1836_v58  ;;  %v1838_v27 = vpop.eup %1837  ;;  %1853 = vpow2.f32 %v714_v50  ;;  %v871_v50 = vld [vmem:[#allocation3 + $0x38] sm:$0xff] }
 0x26b   : > { %1855 = vpow2.f32 %v720_v51 }
 0x26c   : > { %1744 = vmatprep.mubr.bf16.mxu1 %v1079_v38  ;;  %1857 = vpow2.f32 %v718_v61  ;;  %v869_v61 = vld [vmem:[#allocation3 + $0x28] sm:$0xff] }
 0x26d   : > { %v1840_v37 = vpop.eup %1839  ;;  %1859 = vpow2.f32 %v724_v8 }
 0x26e   : > { %926 = vadd.xlane.f32.xlu1 %v1838_v27  ;;  %920 = vadd.xlane.f32.xlu0 %v1836_v58  ;;  %v1080_v62 = vpack.c.bf16 %v1838_v27, %v1840_v37  ;;  %v2334_v52 = vpop.eup %1841  ;;  %1861 = vpow2.f32 %v722_v13 }
 0x26f   : > { %v1844_v63 = vpop.eup %1843  ;;  %1863 = vpow2.f32 %v728_v4  ;;  %v881_v58 = vmul.f32 %v2334_v52, %v865_v32 }
 0x270   : > { %1745 = vmatmul.mubr.bf16.gmra.mrb[12].mxu1 %v1080_v62  ;;  %v1846_v2 = vpop.eup %1845  ;;  %1865 = vpow2.f32 %v726_v49  ;;  %v882_v44 = vmul.f32 %v1844_v63, %v866_v42  ;;  %v876_v42 = vld [vmem:[#allocation3 + $0x60] sm:$0xff] }
 0x271   : > { %v2349_v14 = vpop.eup %1847  ;;  %1867 = vpow2.f32 %v732_v54  ;;  %v880_v30 = vmul.f32 %v1846_v2, %v864_v20  ;;  %v873_v54 = vld [vmem:[#allocation3 + $0x48] sm:$0xff]  ;;  %v879_v20 = vld [vmem:[#allocation3 + $0x78] sm:$0xff] }
 0x272   : > { %922 = vadd.xlane.f32.xlu1 %v1834_v55  ;;  %924 = vadd.xlane.f32.xlu0 %v1840_v37  ;;  %v1850_v21 = vpop.eup %1849  ;;  %1869 = vpow2.f32 %v730_v12  ;;  %v870_v37 = vld [vmem:[#allocation3 + $0x30] sm:$0xff]  ;;  %v884_v60 = vmul.f32 %v2349_v14, %v868_v34 }
 0x273   : > { %v1852_v16 = vpop.eup %1851  ;;  %1871 = vpow2.f32 %v734_v19  ;;  %v883_v40 = vmul.f32 %v1850_v21, %v867_v41 }
 0x274   : > { %v2358_v35 = vpop.eup %1853  ;;  %v886_v31 = vmul.f32 %v1852_v16, %v870_v37 }
 0x275   : > { %v2367_v29 = vpop.eup %1855  ;;  %v885_v8 = vmul.f32 %v2358_v35, %v869_v61 }
 0x276   : > { %v2369_v17 = vpop.eup %1857  ;;  %v888_v22 = vmul.f32 %v2367_v29, %v872_v39 }
 0x277   : > { %v2376_v6 = vpop.eup %1859  ;;  %v887_v59 = vmul.f32 %v2369_v17, %v871_v50 }
 0x278   : > { %v2378_v7 = vpop.eup %1861 }
 0x279   : > { %v2382_v24 = vpop.eup %1863  ;;  %v889_v19 = vmul.f32 %v2378_v7, %v873_v54 }
 0x27a   : > { %v2384_v10 = vpop.eup %1865 }
 0x27b   : > { %v2388_v1 = vpop.eup %1867 }
 0x27c   : > { %v2390_v15 = vpop.eup %1869 }
 0x27d   : > { %v2394_v18 = vpop.eup %1871 }
 0x283   : > { %984 = vperm.xlu1 %1784, %v2334_v52  }
 0x287   : > { %989 = vperm.xlu1 %1784, %v1844_v63  }
 0x288   : > { %979 = vperm.xlu0 %1783, %v1846_v2  }
 0x28b   : > { %999 = vperm.xlu1 %1784, %v2349_v14   ;;  %v874_v14 = vld [vmem:[#allocation3 + $0x50] sm:$0xff] }
 0x28c   : > { %994 = vperm.xlu0 %1783, %v1850_v21   ;;  %v875_v21 = vld [vmem:[#allocation3 + $0x58] sm:$0xff]  ;;  %v890_v4 = vmul.f32 %v2376_v6, %v874_v14 }
 0x28d   : > { %v891_v23 = vmul.f32 %v2384_v10, %v875_v21 }
 0x28f   : > { %1009 = vperm.xlu1 %1784, %v1852_v16  }
 0x290   : > { %1004 = vperm.xlu0 %1783, %v2358_v35  }
 0x293   : > { %1019 = vperm.xlu1 %1784, %v2367_v29   ;;  %v895_v29 = vmul.f32 %v2394_v18, %v879_v20  ;;  %v965_v20 = vld [vmem:[#allocation4 + $0x20] sm:$0xff] }
 0x294   : > { %1014 = vperm.xlu0 %1783, %v2369_v17  }
 0x297   : > { %1029 = vperm.xlu1 %1784, %v2376_v6  }
 0x298   : > { %1024 = vperm.xlu0 %1783, %v2378_v7  }
 0x29b   : > { %1039 = vperm.xlu1 %1784, %v2382_v24  }
 0x29c   : > { %1034 = vperm.xlu0 %1783, %v2384_v10  }
 0x29f   : > { %1049 = vperm.xlu1 %1784, %v2388_v1  }
 0x2a0   : > { %1044 = vperm.xlu0 %1783, %v2390_v15  }
 0x2a4   : > { %1054 = vperm.xlu0 %1783, %v2394_v18  }
 0x2d2   : > { %v901_v33 = vpop.xlane.xlu0 %900 }
 0x2d3   : > { %v930_v25 = vadd.f32 %v901_v33, %v882_v44  ;;  %v897_v47 = vpop.xlane.xlu1 %896 }
 0x2d4   : > { %v928_v26 = vadd.f32 %v897_v47, %v880_v30  ;;  %v892_v47 = vmul.f32 %v2382_v24, %v876_v42 }
 0x2d5   : > { %947 = vst.msk [vmem:[#allocation3 + $0x10] sm:$0xff] %vm300_vm1, %v930_v25 }
 0x2d6   : > { %945 = vst.msk [vmem:[#allocation3] sm:$0xff] %vm300_vm1, %v928_v26  ;;  %v878_v26 = vld [vmem:[#allocation3 + $0x70] sm:$0xff] }
 0x2d7   : > { %v903_v43 = vpop.xlane.xlu1 %902 }
 0x2d8   : > { %v931_v55 = vadd.f32 %v903_v43, %v883_v40  ;;  %v877_v40 = vld [vmem:[#allocation3 + $0x68] sm:$0xff] }
 0x2da   : > { %948 = vst.msk [vmem:[#allocation3 + $0x18] sm:$0xff] %vm300_vm1, %v931_v55  ;;  %v899_v38 = vpop.xlane.xlu0 %898 }
 0x2db   : > { %v929_v27 = vadd.f32 %v899_v38, %v881_v58  ;;  %v894_v38 = vmul.f32 %v2388_v1, %v878_v26 }
 0x2dc   : > { %v1279_v62 = vld [vmem:[#allocation3 + $0x10] sm:$0xff] }
 0x2dd   : > { %946 = vst.msk [vmem:[#allocation3 + $0x8] sm:$0xff] %vm300_vm1, %v929_v27  ;;  %1873 = vrcp.f32 %v1279_v62  ;;  %v1277_v9 = vld [vmem:[#allocation3] sm:$0xff]  ;;  %v893_v27 = vmul.f32 %v2390_v15, %v877_v40 }
 0x2de   : > { %1875 = vrcp.f32 %v1277_v9 }
 0x2df   : > { %v909_v3 = vpop.xlane.xlu0 %908 }
 0x2e0   : > { %v934_v28 = vadd.f32 %v909_v3, %v886_v31 }
 0x2e1   : > { %v1280_v36 = vld [vmem:[#allocation3 + $0x18] sm:$0xff] }
 0x2e2   : > { %951 = vst.msk [vmem:[#allocation3 + $0x30] sm:$0xff] %vm300_vm1, %v934_v28  ;;  %1877 = vrcp.f32 %v1280_v36 }
 0x2e3   : > { %v905_v53 = vpop.xlane.xlu0 %904 }
 0x2e4   : > { %v932_v45 = vadd.f32 %v905_v53, %v884_v60  ;;  %v1278_v48 = vld [vmem:[#allocation3 + $0x8] sm:$0xff] }
 0x2e5   : > { %1879 = vrcp.f32 %v1278_v48 }
 0x2e6   : > { %949 = vst.msk [vmem:[#allocation3 + $0x20] sm:$0xff] %vm300_vm1, %v932_v45 }
 0x2e7   : > { %v1874_v46 = vpop.eup %1873 }
 0x2e8   : > { %1337 = vperm.xlu1 %1784, %v1874_v46   ;;  %v1876_v51 = vpop.eup %1875 }
 0x2e9   : > { %v1283_v52 = vld [vmem:[#allocation3 + $0x30] sm:$0xff] }
 0x2ea   : > { %1881 = vrcp.f32 %v1283_v52 }
 0x2eb   : > { %v911_v57 = vpop.xlane.xlu1 %910 }
 0x2ec   : > { %v1878_v63 = vpop.eup %1877  ;;  %v935_v2 = vadd.f32 %v911_v57, %v887_v59  ;;  %1327 = vperm.xlu1 %1784, %v1876_v51  }
 0x2ed   : > { %1342 = vperm.xlu0 %1783, %v1878_v63   ;;  %v1281_v5 = vld [vmem:[#allocation3 + $0x20] sm:$0xff] }
 0x2ee   : > { %952 = vst.msk [vmem:[#allocation3 + $0x38] sm:$0xff] %vm300_vm1, %v935_v2  ;;  %1883 = vrcp.f32 %v1281_v5  ;;  %v963_v2 = vld [vmem:[#allocation4 + $0x10] sm:$0xff]  ;;  %v961_v5 = vld [vmem:[#allocation4] sm:$0xff] }
 0x2ef   : > { %v1880_v11 = vpop.eup %1879  ;;  %v907_v13 = vpop.xlane.xlu1 %906 }
 0x2f0   : > { %v933_v0 = vadd.f32 %v907_v13, %v885_v8  ;;  %v964_v8 = vld [vmem:[#allocation4 + $0x18] sm:$0xff]  ;;  %v962_v13 = vld [vmem:[#allocation4 + $0x8] sm:$0xff] }
 0x2f1   : > { %1332 = vperm.xlu0 %1783, %v1880_v11  }
 0x2f2   : > { %950 = vst.msk [vmem:[#allocation3 + $0x28] sm:$0xff] %vm300_vm1, %v933_v0 }
 0x2f3   : > { %v917_v49 = vpop.xlane.xlu0 %916  ;;  %v919_v16 = vpop.xlane.xlu1 %918 }
 0x2f4   : > { %v1882_v56 = vpop.eup %1881  ;;  %v938_v12 = vadd.f32 %v917_v49, %v890_v4  ;;  %v939_v35 = vadd.f32 %v919_v16, %v891_v23 }
 0x2f5   : > { %1357 = vperm.xlu1 %1784, %v1882_v56   ;;  %v1284_v17 = vld [vmem:[#allocation3 + $0x38] sm:$0xff] }
 0x2f6   : > { %955 = vst.msk [vmem:[#allocation3 + $0x50] sm:$0xff] %vm300_vm1, %v938_v12  ;;  %956 = vst.msk [vmem:[#allocation3 + $0x58] sm:$0xff] %vm300_vm1, %v939_v35  ;;  %1885 = vrcp.f32 %v1284_v17 }
 0x2f7   : > { %v913_v6 = vpop.xlane.xlu0 %912  ;;  %v915_v10 = vpop.xlane.xlu1 %914 }
 0x2f8   : > { %v1884_v44 = vpop.eup %1883  ;;  %v936_v33 = vadd.f32 %v913_v6, %v888_v22  ;;  %v937_v30 = vadd.f32 %v915_v10, %v889_v19  ;;  %v967_v10 = vld [vmem:[#allocation4 + $0x30] sm:$0xff] }
 0x2f9   : > { %1347 = vperm.xlu1 %1784, %v1884_v44   ;;  %v1282_v25 = vld [vmem:[#allocation3 + $0x28] sm:$0xff]  ;;  %v968_v44 = vld [vmem:[#allocation4 + $0x38] sm:$0xff] }
 0x2fa   : > { %953 = vst.msk [vmem:[#allocation3 + $0x40] sm:$0xff] %vm300_vm1, %v936_v33  ;;  %954 = vst.msk [vmem:[#allocation3 + $0x48] sm:$0xff] %vm300_vm1, %v937_v30  ;;  %1887 = vrcp.f32 %v1282_v25  ;;  %v966_v33 = vld [vmem:[#allocation4 + $0x28] sm:$0xff] }
 0x2fb   : > { %v921_v7 = vpop.xlane.xlu0 %920  ;;  %v927_v41 = vpop.xlane.xlu1 %926 }
 0x2fc   : > { %v940_v32 = vadd.f32 %v921_v7, %v892_v47  ;;  %v943_v43 = vadd.f32 %v927_v41, %v895_v29 }
 0x2fd   : > { %v1287_v55 = vld [vmem:[#allocation3 + $0x50] sm:$0xff]  ;;  %v1288_v58 = vld [vmem:[#allocation3 + $0x58] sm:$0xff] }
 0x2fe   : > { %957 = vst.msk [vmem:[#allocation3 + $0x60] sm:$0xff] %vm300_vm1, %v940_v32  ;;  %960 = vst.msk [vmem:[#allocation3 + $0x78] sm:$0xff] %vm300_vm1, %v943_v43  ;;  %1889 = vrcp.f32 %v1287_v55 }
 0x2ff   : > { %v925_v24 = vpop.xlane.xlu0 %924  ;;  %v923_v18 = vpop.xlane.xlu1 %922  ;;  %1891 = vrcp.f32 %v1288_v58 }
 0x300   : > { %v1886_v37 = vpop.eup %1885  ;;  %v942_v62 = vadd.f32 %v925_v24, %v894_v38  ;;  %v941_v31 = vadd.f32 %v923_v18, %v893_v27  ;;  %v971_v27 = vld [vmem:[#allocation4 + $0x50] sm:$0xff]  ;;  %v969_v18 = vld [vmem:[#allocation4 + $0x40] sm:$0xff] }
 0x301   : > { %1362 = vperm.xlu0 %1783, %v1886_v37   ;;  %v1285_v9 = vld [vmem:[#allocation3 + $0x40] sm:$0xff]  ;;  %v1286_v3 = vld [vmem:[#allocation3 + $0x48] sm:$0xff]  ;;  %v972_v37 = vld [vmem:[#allocation4 + $0x58] sm:$0xff] }
 0x302   : > { %959 = vst.msk [vmem:[#allocation3 + $0x70] sm:$0xff] %vm300_vm1, %v942_v62  ;;  %958 = vst.msk [vmem:[#allocation3 + $0x68] sm:$0xff] %vm300_vm1, %v941_v31  ;;  %1893 = vrcp.f32 %v1285_v9  ;;  %v970_v31 = vld [vmem:[#allocation4 + $0x48] sm:$0xff] }
 0x303   : > { %1895 = vrcp.f32 %v1286_v3  ;;  %v985_v59 = vpop.permute.xlu1 %984 }
 0x304   : > { %v1888_v34 = vpop.eup %1887  ;;  %v1058_v39 = vmul.f32 %v985_v59, %v962_v13 }
 0x305   : > { %1352 = vperm.xlu0 %1783, %v1888_v34   ;;  %v1289_v1 = vld [vmem:[#allocation3 + $0x60] sm:$0xff]  ;;  %v1292_v45 = vld [vmem:[#allocation3 + $0x78] sm:$0xff] }
 0x306   : > { %1897 = vrcp.f32 %v1289_v1 }
 0x307   : > { %v980_v51 = vpop.permute.xlu0 %979  ;;  %v990_v61 = vpop.permute.xlu1 %989 }
 0x308   : > { %v1890_v15 = vpop.eup %1889  ;;  %v1059_v14 = vmul.f32 %v990_v61, %v963_v2  ;;  %v1057_v21 = vmul.f32 %v980_v51, %v961_v5  ;;  %v973_v51 = vld [vmem:[#allocation4 + $0x60] sm:$0xff] }
 0x309   : > { %v1892_v28 = vpop.eup %1891  ;;  %1377 = vperm.xlu1 %1784, %v1890_v15   ;;  %v1291_v36 = vld [vmem:[#allocation3 + $0x70] sm:$0xff]  ;;  %v1290_v60 = vld [vmem:[#allocation3 + $0x68] sm:$0xff] }
 0x30a   : > { %1382 = vperm.xlu0 %1783, %v1892_v28   ;;  %1899 = vrcp.f32 %v1291_v36 }
 0x30b   : > { %1901 = vrcp.f32 %v1290_v60  ;;  %v995_v63 = vpop.permute.xlu0 %994  ;;  %v1000_v11 = vpop.permute.xlu1 %999 }
 0x30c   : > { %v1894_v53 = vpop.eup %1893  ;;  %1903 = vrcp.f32 %v1292_v45  ;;  %v1060_v23 = vmul.f32 %v995_v63, %v964_v8  ;;  %v1061_v25 = vmul.f32 %v1000_v11, %v965_v20  ;;  %v974_v63 = vld [vmem:[#allocation4 + $0x68] sm:$0xff] }
 0x30d   : > { %v1896_v48 = vpop.eup %1895  ;;  %1367 = vperm.xlu1 %1784, %v1894_v53  }
 0x30e   : > { %1372 = vperm.xlu0 %1783, %v1896_v48  }
 0x30f   : > { %v1005_v0 = vpop.permute.xlu0 %1004  ;;  %v1010_v17 = vpop.permute.xlu1 %1009 }
 0x310   : > { %v1898_v46 = vpop.eup %1897  ;;  %v1063_v30 = vmul.f32 %v1010_v17, %v967_v10  ;;  %v1062_v40 = vmul.f32 %v1005_v0, %v966_v33 }
 0x311   : > { %1387 = vperm.xlu1 %1784, %v1898_v46  }
 0x313   : > { %v1015_v19 = vpop.permute.xlu0 %1014  ;;  %v1020_v6 = vpop.permute.xlu1 %1019 }
 0x314   : > { %v1900_v50 = vpop.eup %1899  ;;  %v1064_v7 = vmul.f32 %v1015_v19, %v968_v44  ;;  %v1065_v3 = vmul.f32 %v1020_v6, %v969_v18 }
 0x315   : > { %v1902_v52 = vpop.eup %1901  ;;  %1397 = vperm.xlu1 %1784, %v1900_v50   ;;  %v975_v50 = vld [vmem:[#allocation4 + $0x70] sm:$0xff] }
 0x316   : > { %1392 = vperm.xlu0 %1783, %v1902_v52   ;;  %v1904_v57 = vpop.eup %1903 }
 0x317   : > { %v1025_v42 = vpop.permute.xlu0 %1024  ;;  %v1030_v47 = vpop.permute.xlu1 %1029 }
 0x318   : > { %v1067_v9 = vmul.f32 %v1030_v47, %v971_v27  ;;  %v1066_v60 = vmul.f32 %v1025_v42, %v970_v31 }
 0x31a   : > { %1402 = vperm.xlu0 %1783, %v1904_v57   ;;  %v976_v57 = vld [vmem:[#allocation4 + $0x78] sm:$0xff] }
 0x31b   : > { %v1035_v32 = vpop.permute.xlu0 %1034  ;;  %v1040_v62 = vpop.permute.xlu1 %1039 }
 0x31c   : > { %v1068_v15 = vmul.f32 %v1035_v32, %v972_v37  ;;  %v1069_v5 = vmul.f32 %v1040_v62, %v973_v51 }
 0x31f   : > { %v1045_v34 = vpop.permute.xlu0 %1044  ;;  %v1050_v52 = vpop.permute.xlu1 %1049 }
 0x320   : > { %v1071_v2 = vmul.f32 %v1050_v52, %v975_v50 }
 0x323   : > { %v1734_v4 = vpop.f32.mrb[0].mxu1  ;;  %v1055_v61 = vpop.permute.xlu0 %1054 }
 0x324   : > { %v1228_v49 = vadd.f32 %v1734_v4, %v1059_v14  ;;  %v1163_v16 = vpop.f32.mrb[1].mxu1  ;;  %v1072_v11 = vmul.f32 %v1055_v61, %v976_v57 }
 0x325   : > { %v1226_v54 = vadd.f32 %v1163_v16, %v1057_v21  ;;  %v1735_v56 = vpop.f32.mrb[2].mxu1  ;;  %v1070_v21 = vmul.f32 %v1045_v34, %v974_v63 }
 0x326   : > { %1244 = vst.msk [vmem:[#allocation4 + $0x10] sm:$0xff] %vm333_vm0, %v1228_v49  ;;  %v1229_v12 = vadd.f32 %v1735_v56, %v1060_v23  ;;  %v1166_v35 = vpop.f32.mrb[3].mxu1 }
 0x327   : > { %1242 = vst.msk [vmem:[#allocation4] sm:$0xff] %vm333_vm0, %v1226_v54  ;;  %v1227_v22 = vadd.f32 %v1166_v35, %v1058_v39 }
 0x328   : > { %1245 = vst.msk [vmem:[#allocation4 + $0x18] sm:$0xff] %vm333_vm0, %v1229_v12 }
 0x329   : > { %1243 = vst.msk [vmem:[#allocation4 + $0x8] sm:$0xff] %vm333_vm0, %v1227_v22 }
 0x32d   : > { %v1311_v39 = vld [vmem:[#allocation4 + $0x10] sm:$0xff] }
 0x32e   : > { %v1309_v12 = vld [vmem:[#allocation4] sm:$0xff] }
 0x32f   : > { %v1312_v22 = vld [vmem:[#allocation4 + $0x18] sm:$0xff] }
 0x330   : > { %v1310_v42 = vld [vmem:[#allocation4 + $0x8] sm:$0xff] }
 0x333   : > { %v1738_v29 = vpop.f32.mrb[4].mxu1 }
 0x334   : > { %v1232_v41 = vadd.f32 %v1738_v29, %v1063_v30  ;;  %v1179_v26 = vpop.f32.mrb[5].mxu1 }
 0x335   : > { %v1230_v43 = vadd.f32 %v1179_v26, %v1061_v25  ;;  %v1739_v55 = vpop.f32.mrb[6].mxu1 }
 0x336   : > { %1248 = vst.msk [vmem:[#allocation4 + $0x30] sm:$0xff] %vm333_vm0, %v1232_v41  ;;  %v1233_v58 = vadd.f32 %v1739_v55, %v1064_v7  ;;  %v1182_v38 = vpop.f32.mrb[7].mxu1 }
 0x337   : > { %1246 = vst.msk [vmem:[#allocation4 + $0x20] sm:$0xff] %vm333_vm0, %v1230_v43  ;;  %v1231_v24 = vadd.f32 %v1182_v38, %v1062_v40 }
 0x338   : > { %1249 = vst.msk [vmem:[#allocation4 + $0x38] sm:$0xff] %vm333_vm0, %v1233_v58 }
 0x339   : > { %1247 = vst.msk [vmem:[#allocation4 + $0x28] sm:$0xff] %vm333_vm0, %v1231_v24 }
 0x33b   : > { %v1742_v1 = vpop.f32.mrb[8].mxu1 }
 0x33c   : > { %v1236_v28 = vadd.f32 %v1742_v1, %v1067_v9  ;;  %v1195_v36 = vpop.f32.mrb[9].mxu1 }
 0x33d   : > { %v1234_v53 = vadd.f32 %v1195_v36, %v1065_v3  ;;  %v1743_v45 = vpop.f32.mrb[10].mxu1  ;;  %v1315_v44 = vld [vmem:[#allocation4 + $0x30] sm:$0xff] }
 0x33e   : > { %1252 = vst.msk [vmem:[#allocation4 + $0x50] sm:$0xff] %vm333_vm0, %v1236_v28  ;;  %v1237_v48 = vadd.f32 %v1743_v45, %v1068_v15  ;;  %v1198_v46 = vpop.f32.mrb[11].mxu1  ;;  %v1313_v25 = vld [vmem:[#allocation4 + $0x20] sm:$0xff] }
 0x33f   : > { %1250 = vst.msk [vmem:[#allocation4 + $0x40] sm:$0xff] %vm333_vm0, %v1234_v53  ;;  %v1235_v59 = vadd.f32 %v1198_v46, %v1066_v60  ;;  %v1316_v7 = vld [vmem:[#allocation4 + $0x38] sm:$0xff] }
 0x340   : > { %1253 = vst.msk [vmem:[#allocation4 + $0x58] sm:$0xff] %vm333_vm0, %v1237_v48  ;;  %v1314_v40 = vld [vmem:[#allocation4 + $0x28] sm:$0xff] }
 0x341   : > { %1251 = vst.msk [vmem:[#allocation4 + $0x48] sm:$0xff] %vm333_vm0, %v1235_v59 }
 0x343   : > { %v1746_v8 = vpop.f32.mrb[12].mxu1 }
 0x344   : > { %v1240_v13 = vadd.f32 %v1746_v8, %v1071_v2  ;;  %v1211_v14 = vpop.f32.mrb[13].mxu1 }
 0x345   : > { %v1238_v0 = vadd.f32 %v1211_v14, %v1069_v5  ;;  %v1747_v4 = vpop.f32.mrb[14].mxu1  ;;  %v1319_v55 = vld [vmem:[#allocation4 + $0x50] sm:$0xff] }
 0x346   : > { %1256 = vst.msk [vmem:[#allocation4 + $0x70] sm:$0xff] %vm333_vm0, %v1240_v13  ;;  %v1241_v23 = vadd.f32 %v1747_v4, %v1072_v11  ;;  %v1214_v49 = vpop.f32.mrb[15].mxu1  ;;  %v1317_v37 = vld [vmem:[#allocation4 + $0x40] sm:$0xff] }
 0x347   : > { %1254 = vst.msk [vmem:[#allocation4 + $0x60] sm:$0xff] %vm333_vm0, %v1238_v0  ;;  %v1239_v16 = vadd.f32 %v1214_v49, %v1070_v21  ;;  %v1320_v38 = vld [vmem:[#allocation4 + $0x58] sm:$0xff] }
 0x348   : > { %1257 = vst.msk [vmem:[#allocation4 + $0x78] sm:$0xff] %vm333_vm0, %v1241_v23  ;;  %v1318_v31 = vld [vmem:[#allocation4 + $0x48] sm:$0xff] }
 0x349   : > { %1255 = vst.msk [vmem:[#allocation4 + $0x68] sm:$0xff] %vm333_vm0, %v1239_v16 }
 0x34d   : > { %v1323_v36 = vld [vmem:[#allocation4 + $0x70] sm:$0xff] }
 0x34e   : > { %v1321_v1 = vld [vmem:[#allocation4 + $0x60] sm:$0xff] }
 0x34f   : > { %v1324_v50 = vld [vmem:[#allocation4 + $0x78] sm:$0xff] }
 0x350   : > { %v1322_v53 = vld [vmem:[#allocation4 + $0x68] sm:$0xff] }
 0x367   : > { %v1338_v54 = vpop.permute.xlu1 %1337 }
 0x368   : > { %v1407_v56 = vmul.f32 %v1338_v54, %v1311_v39 }
 0x36a   : > { %1423 = vst.msk [vmem:[%s2445_s29 + $0x10] sm:$0xff] %vm333_vm0, %v1407_v56 }
 0x36b   : > { %v1328_v35 = vpop.permute.xlu1 %1327 }
 0x36c   : > { %v1405_v17 = vmul.f32 %v1328_v35, %v1309_v12  ;;  %v1343_v19 = vpop.permute.xlu0 %1342 }
 0x36d   : > { %v1408_v6 = vmul.f32 %v1343_v19, %v1312_v22 }
 0x36e   : > { %1421 = vst.msk [vmem:[%s2445_s29] sm:$0xff] %vm333_vm0, %v1405_v17 }
 0x36f   : > { %1424 = vst.msk [vmem:[%s2445_s29 + $0x18] sm:$0xff] %vm333_vm0, %v1408_v6 }
 0x370   : > { %v1333_v10 = vpop.permute.xlu0 %1332 }
 0x371   : > { %v1406_v20 = vmul.f32 %v1333_v10, %v1310_v42 }
 0x373   : > { %1422 = vst.msk [vmem:[%s2445_s29 + $0x8] sm:$0xff] %vm333_vm0, %v1406_v20 }
 0x374   : > { %v1358_v33 = vpop.permute.xlu1 %1357 }
 0x375   : > { %v1411_v30 = vmul.f32 %v1358_v33, %v1315_v44 }
 0x377   : > { %1427 = vst.msk [vmem:[%s2445_s29 + $0x30] sm:$0xff] %vm333_vm0, %v1411_v30 }
 0x378   : > { %v1348_v47 = vpop.permute.xlu1 %1347 }
 0x379   : > { %v1409_v29 = vmul.f32 %v1348_v47, %v1313_v25 }
 0x37b   : > { %1425 = vst.msk [vmem:[%s2445_s29 + $0x20] sm:$0xff] %vm333_vm0, %v1409_v29 }
 0x380   : > { %v1363_v41 = vpop.permute.xlu0 %1362 }
 0x381   : > { %v1412_v26 = vmul.f32 %v1363_v41, %v1316_v7 }
 0x383   : > { %1428 = vst.msk [vmem:[%s2445_s29 + $0x38] sm:$0xff] %vm333_vm0, %v1412_v26 }
 0x384   : > { %v1353_v32 = vpop.permute.xlu0 %1352 }
 0x385   : > { %v1410_v43 = vmul.f32 %v1353_v32, %v1314_v40 }
 0x387   : > { %1426 = vst.msk [vmem:[%s2445_s29 + $0x28] sm:$0xff] %vm333_vm0, %v1410_v43 }
 0x388   : > { %v1378_v58 = vpop.permute.xlu1 %1377 }
 0x389   : > { %v1383_v27 = vpop.permute.xlu0 %1382  ;;  %v1415_v24 = vmul.f32 %v1378_v58, %v1319_v55 }
 0x38a   : > { %v1416_v18 = vmul.f32 %v1383_v27, %v1320_v38 }
 0x38b   : > { %1431 = vst.msk [vmem:[%s2445_s29 + $0x50] sm:$0xff] %vm333_vm0, %v1415_v24 }
 0x38c   : > { %1432 = vst.msk [vmem:[%s2445_s29 + $0x58] sm:$0xff] %vm333_vm0, %v1416_v18  ;;  %v1368_v62 = vpop.permute.xlu1 %1367 }
 0x38d   : > { %v1373_v9 = vpop.permute.xlu0 %1372  ;;  %v1413_v3 = vmul.f32 %v1368_v62, %v1317_v37 }
 0x38e   : > { %v1414_v34 = vmul.f32 %v1373_v9, %v1318_v31 }
 0x38f   : > { %1429 = vst.msk [vmem:[%s2445_s29 + $0x40] sm:$0xff] %vm333_vm0, %v1413_v3 }
 0x390   : > { %1430 = vst.msk [vmem:[%s2445_s29 + $0x48] sm:$0xff] %vm333_vm0, %v1414_v34  ;;  %v1388_v15 = vpop.permute.xlu1 %1387 }
 0x391   : > { %v1417_v28 = vmul.f32 %v1388_v15, %v1321_v1 }
 0x393   : > { %1433 = vst.msk [vmem:[%s2445_s29 + $0x60] sm:$0xff] %vm333_vm0, %v1417_v28 }
 0x394   : > { %v1398_v60 = vpop.permute.xlu1 %1397 }
 0x395   : > { %v1393_v45 = vpop.permute.xlu0 %1392  ;;  %v1419_v48 = vmul.f32 %v1398_v60, %v1323_v36 }
 0x396   : > { %v1418_v46 = vmul.f32 %v1393_v45, %v1322_v53 }
 0x397   : > { %1435 = vst.msk [vmem:[%s2445_s29 + $0x70] sm:$0xff] %vm333_vm0, %v1419_v48 }
 0x398   : > { %1434 = vst.msk [vmem:[%s2445_s29 + $0x68] sm:$0xff] %vm333_vm0, %v1418_v46 }
 0x399   : > { %v1403_v52 = vpop.permute.xlu0 %1402 }
 0x39a   : > { %v1420_v59 = vmul.f32 %v1403_v52, %v1324_v50 }
 0x39c   : > { %1436 = vst.msk [vmem:[%s2445_s29 + $0x78] sm:$0xff] %vm333_vm0, %v1420_v59 }
 0x39d PF: > { %s13_s14 = sadd.s32 1, %s1927_s14   ;;  %s2506_s12 = smov %s1923_s13 }
 0x39e   : > { %p10_p5 = scmp.ge.s32.totalorder %s13_s14, 6   ;;  %s2507_s13 = smov %s2509_s15 }
 0x3a0   :  { %12 = sbr.rel (!%p10_p5) target bundleno = 2 (0x2), region = 76 }

</bundles_post_ra>
